<compile_context>
chip_gen: v5e
topology: v5e:2x2
jax: 0.10.0
libtpu: 0.0.40
codegen_flags: <defaults>
</compile_context>

<pallas_src>
import functools

import jax
import jax.numpy as jnp
from jax import lax
from jax.experimental import pallas as pl
from jax.experimental.pallas import tpu as pltpu

# Small sizes consistent with the module's forward
VOCAB = 50
EMBED = 32
HIDDEN = 32
SEQ = 8
BATCH = 2


def encoder_kernel(src_ref, emb_ref, w_ihT_ref, w_hhT_ref, b_ref, hc_out_ref,
                   *, seq_len, batch, hidden):
    """src_ref: (S*B, 1) int32 tokens (batch-major within each timestep).
    emb_ref: (V, E) embedding table.
    w_ihT_ref: (E, 4H), w_hhT_ref: (H, 4H)  (PyTorch weights pre-transposed).
    b_ref: (1, 4H) combined bias.
    hc_out_ref: (B, 2H) output slab with h in [:, :H] and c in [:, H:]."""
    H = hidden
    B = batch
    V = emb_ref.shape[0]
    rows = seq_len * batch

    # ---- Embedding lookup as a one-hot matmul on the MXU (off the serial chain). ----
    tok = src_ref[...]                                                    # (S*B, 1) int32
    onehot = (tok == lax.broadcasted_iota(jnp.int32, (rows, V), 1)
              ).astype(jnp.float32)                                       # (S*B, V)
    x = jnp.dot(onehot, emb_ref[...], preferred_element_type=jnp.float32)  # (S*B, E)

    # ---- Hoisted input projection for all timesteps (bias folded in). ----
    gates_in = (jnp.dot(x, w_ihT_ref[...], preferred_element_type=jnp.float32)
                + b_ref[...])                                             # (S*B, 4H)
    w_hhT = w_hhT_ref[...]                                                # (H, 4H)

    # Pre-extract per-step (B, 4H) gate slices: independent of h, so this sublane work
    # overlaps with the projection above instead of sitting between recurrence steps.
    g_in = [gates_in[t * B:(t + 1) * B, :] for t in range(seq_len)]

    # ---- t = 0: h = c = 0, so skip the recurrent matmul and the f*c term. ----
    # PyTorch LSTM gate order along the 4H axis: i, f, g, o.
    g0 = g_in[0]
    sig0 = jax.nn.sigmoid(g0)                       # one full-width EUP pass (i, f, o)
    c = sig0[:, 0:H] * jnp.tanh(g0[:, 2 * H:3 * H])
    h = sig0[:, 3 * H:4 * H] * jnp.tanh(c)

    # ---- Remaining steps: fixed trip count, fully unrolled recurrence. ----
    for t in range(1, seq_len):
        g = g_in[t] + jnp.dot(h, w_hhT, preferred_element_type=jnp.float32)  # (B, 4H)
        sig = jax.nn.sigmoid(g)                     # full-width: i, f, o in one EUP pass
        i_g = sig[:, 0:H]
        f_g = sig[:, H:2 * H]
        o_g = sig[:, 3 * H:4 * H]
        g_g = jnp.tanh(g[:, 2 * H:3 * H])
        c = f_g * c + i_g * g_g
        h = o_g * jnp.tanh(c)

    # Single lane-contiguous output slab: [h | c].
    hc_out_ref[:, 0:H] = h
    hc_out_ref[:, H:2 * H] = c


@jax.jit
def encoder_forward(src, emb_table, w_ih, w_hh, b_ih, b_hh):
    """Returns (hidden, cell), each of shape (1, batch, hidden) like PyTorch nn.LSTM."""
    S, B = src.shape
    H = w_hh.shape[1]

    # Tiny prep ops; fused / constant-folded under the enclosing jit.
    src_col = src.reshape(S * B, 1).astype(jnp.int32)        # batch-major per timestep
    w_ihT = w_ih.T.astype(jnp.float32)                       # (E, 4H)
    w_hhT = w_hh.T.astype(jnp.float32)                       # (H, 4H)
    b = (b_ih + b_hh).reshape(1, 4 * H).astype(jnp.float32)  # combined bias

    kernel = functools.partial(encoder_kernel, seq_len=S, batch=B, hidden=H)

    hc = pl.pallas_call(
        kernel,
        out_shape=jax.ShapeDtypeStruct((B, 2 * H), jnp.float32),
        in_specs=[pl.BlockSpec(memory_space=pltpu.MemorySpace.VMEM)] * 5,
        out_specs=pl.BlockSpec(memory_space=pltpu.MemorySpace.VMEM),
    )(src_col, emb_table.astype(jnp.float32), w_ihT, w_hhT, b)

    h = hc[:, 0:H]
    c = hc[:, H:2 * H]
    # PyTorch: hidden/cell shape = (num_layers*num_directions=1, batch, hidden)
    return h[None, :, :], c[None, :, :]


def encoder_ref(src, emb_table, w_ih, w_hh, b_ih, b_hh):
    """Pure-JAX reference matching torch.nn.LSTM forward (zero initial state)."""
    H = w_hh.shape[1]
    emb = emb_table[src]                                # (S, B, E)
    B = src.shape[1]

    def step(carry, x_t):
        h, c = carry
        gates = x_t @ w_ih.T + h @ w_hh.T + b_ih + b_hh
        i = jax.nn.sigmoid(gates[:, 0:H])
        f = jax.nn.sigmoid(gates[:, H:2 * H])
        g = jnp.tanh(gates[:, 2 * H:3 * H])
        o = jax.nn.sigmoid(gates[:, 3 * H:4 * H])
        c = f * c + i * g
        h = o * jnp.tanh(c)
        return (h, c), None

    h0 = jnp.zeros((B, H), jnp.float32)
    c0 = jnp.zeros((B, H), jnp.float32)
    (h, c), _ = jax.lax.scan(step, (h0, c0), emb)
    return h[None], c[None]


if __name__ == "__main__":
    key = jax.random.PRNGKey(0)
    k1, k2, k3, k4, k5, k6 = jax.random.split(key, 6)

    # Deterministic synthetic parameters (shapes from nn.Embedding / nn.LSTM __init__).
    emb_table = jax.random.normal(k1, (VOCAB, EMBED), jnp.float32)
    bound = 1.0 / (HIDDEN ** 0.5)
    w_ih = jax.random.uniform(k2, (4 * HIDDEN, EMBED), jnp.float32, -bound, bound)
    w_hh = jax.random.uniform(k3, (4 * HIDDEN, HIDDEN), jnp.float32, -bound, bound)
    b_ih = jax.random.uniform(k4, (4 * HIDDEN,), jnp.float32, -bound, bound)
    b_hh = jax.random.uniform(k5, (4 * HIDDEN,), jnp.float32, -bound, bound)

    src = jax.random.randint(k6, (SEQ, BATCH), 0, VOCAB, dtype=jnp.int32)

    hidden, cell = encoder_forward(src, emb_table, w_ih, w_hh, b_ih, b_hh)
    jax.block_until_ready((hidden, cell))

    h_ref, c_ref = encoder_ref(src, emb_table, w_ih, w_hh, b_ih, b_hh)
    assert hidden.shape == (1, BATCH, HIDDEN) and cell.shape == (1, BATCH, HIDDEN)
    assert jnp.allclose(hidden, h_ref, atol=1e-5, rtol=1e-5)
    assert jnp.allclose(cell, c_ref, atol=1e-5, rtol=1e-5)
    print("KERNEL_OK")
</pallas_src>

<mosaic_0001>
module attributes {stable_mosaic.version = 11 : i64} {
  func.func @encoder_kernel(%arg0: memref<16x1xi32, #tpu.memory_space<vmem>>, %arg1: memref<50x32xf32, #tpu.memory_space<vmem>>, %arg2: memref<32x128xf32, #tpu.memory_space<vmem>>, %arg3: memref<32x128xf32, #tpu.memory_space<vmem>>, %arg4: memref<1x128xf32, #tpu.memory_space<vmem>>, %arg5: memref<2x64xf32, #tpu.memory_space<vmem>>) attributes {dimension_semantics = [], scalar_prefetch = 0 : i64, scratch_operands = 0 : i64, tpu.core_type = #tpu.core_type<tc>} {
    %c0 = arith.constant 0 : index
    %c0_0 = arith.constant 0 : index
    %0 = vector.load %arg0[%c0, %c0_0] : memref<16x1xi32, #tpu.memory_space<vmem>>, vector<16x1xi32>
    %1 = tpu.iota {dimensions = array<i32: 1>} : vector<16x50xi32>
    %2 = vector.broadcast %0 : vector<16x1xi32> to vector<16x50xi32>
    %3 = arith.cmpi eq, %2, %1 : vector<16x50xi32>
    %4 = arith.extui %3 : vector<16x50xi1> to vector<16x50xi32>
    %5 = arith.sitofp %4 : vector<16x50xi32> to vector<16x50xf32>
    %c0_1 = arith.constant 0 : index
    %c0_2 = arith.constant 0 : index
    %6 = vector.load %arg1[%c0_1, %c0_2] : memref<50x32xf32, #tpu.memory_space<vmem>>, vector<50x32xf32>
    %cst = arith.constant dense<0.000000e+00> : vector<16x32xf32>
    %7 = tpu.matmul %5, %6, %cst {dimension_numbers = #tpu.dot_dimension_numbers<[1], [0], [0], [1], [0, 0, 1, 1], [], []>} : vector<16x50xf32>, vector<50x32xf32>, vector<16x32xf32> -> vector<16x32xf32>
    %c0_3 = arith.constant 0 : index
    %c0_4 = arith.constant 0 : index
    %8 = vector.load %arg2[%c0_3, %c0_4] : memref<32x128xf32, #tpu.memory_space<vmem>>, vector<32x128xf32>
    %cst_5 = arith.constant dense<0.000000e+00> : vector<16x128xf32>
    %9 = tpu.matmul %7, %8, %cst_5 {dimension_numbers = #tpu.dot_dimension_numbers<[1], [0], [0], [1], [0, 0, 1, 1], [], []>} : vector<16x32xf32>, vector<32x128xf32>, vector<16x128xf32> -> vector<16x128xf32>
    %c0_6 = arith.constant 0 : index
    %c0_7 = arith.constant 0 : index
    %10 = vector.load %arg4[%c0_6, %c0_7] : memref<1x128xf32, #tpu.memory_space<vmem>>, vector<1x128xf32>
    %11 = vector.broadcast %10 : vector<1x128xf32> to vector<16x128xf32>
    %12 = arith.addf %9, %11 : vector<16x128xf32>
    %c0_8 = arith.constant 0 : index
    %c0_9 = arith.constant 0 : index
    %13 = vector.load %arg3[%c0_8, %c0_9] : memref<32x128xf32, #tpu.memory_space<vmem>>, vector<32x128xf32>
    %14 = vector.extract_strided_slice %12 {offsets = [0, 0], sizes = [2, 128], strides = [1, 1]} : vector<16x128xf32> to vector<2x128xf32>
    %15 = vector.extract_strided_slice %12 {offsets = [2, 0], sizes = [2, 128], strides = [1, 1]} : vector<16x128xf32> to vector<2x128xf32>
    %16 = vector.extract_strided_slice %12 {offsets = [4, 0], sizes = [2, 128], strides = [1, 1]} : vector<16x128xf32> to vector<2x128xf32>
    %17 = vector.extract_strided_slice %12 {offsets = [6, 0], sizes = [2, 128], strides = [1, 1]} : vector<16x128xf32> to vector<2x128xf32>
    %18 = vector.extract_strided_slice %12 {offsets = [8, 0], sizes = [2, 128], strides = [1, 1]} : vector<16x128xf32> to vector<2x128xf32>
    %19 = vector.extract_strided_slice %12 {offsets = [10, 0], sizes = [2, 128], strides = [1, 1]} : vector<16x128xf32> to vector<2x128xf32>
    %20 = vector.extract_strided_slice %12 {offsets = [12, 0], sizes = [2, 128], strides = [1, 1]} : vector<16x128xf32> to vector<2x128xf32>
    %21 = vector.extract_strided_slice %12 {offsets = [14, 0], sizes = [2, 128], strides = [1, 1]} : vector<16x128xf32> to vector<2x128xf32>
    %22 = arith.negf %14 : vector<2x128xf32>
    %23 = math.exp %22 : vector<2x128xf32>
    %cst_10 = arith.constant 1.000000e+00 : f32
    %24 = vector.broadcast %cst_10 : f32 to vector<2x128xf32>
    %25 = arith.addf %24, %23 : vector<2x128xf32>
    %26 = arith.divf %24, %25 : vector<2x128xf32>
    %27 = vector.extract_strided_slice %26 {offsets = [0, 0], sizes = [2, 32], strides = [1, 1]} : vector<2x128xf32> to vector<2x32xf32>
    %28 = vector.extract_strided_slice %14 {offsets = [0, 64], sizes = [2, 32], strides = [1, 1]} : vector<2x128xf32> to vector<2x32xf32>
    %29 = math.tanh %28 : vector<2x32xf32>
    %30 = arith.mulf %27, %29 : vector<2x32xf32>
    %31 = vector.extract_strided_slice %26 {offsets = [0, 96], sizes = [2, 32], strides = [1, 1]} : vector<2x128xf32> to vector<2x32xf32>
    %32 = math.tanh %30 : vector<2x32xf32>
    %33 = arith.mulf %31, %32 : vector<2x32xf32>
    %cst_11 = arith.constant dense<0.000000e+00> : vector<2x128xf32>
    %34 = tpu.matmul %33, %13, %cst_11 {dimension_numbers = #tpu.dot_dimension_numbers<[1], [0], [0], [1], [0, 0, 1, 1], [], []>} : vector<2x32xf32>, vector<32x128xf32>, vector<2x128xf32> -> vector<2x128xf32>
    %35 = arith.addf %15, %34 : vector<2x128xf32>
    %36 = arith.negf %35 : vector<2x128xf32>
    %37 = math.exp %36 : vector<2x128xf32>
    %cst_12 = arith.constant 1.000000e+00 : f32
    %38 = vector.broadcast %cst_12 : f32 to vector<2x128xf32>
    %39 = arith.addf %38, %37 : vector<2x128xf32>
    %40 = arith.divf %38, %39 : vector<2x128xf32>
    %41 = vector.extract_strided_slice %40 {offsets = [0, 0], sizes = [2, 32], strides = [1, 1]} : vector<2x128xf32> to vector<2x32xf32>
    %42 = vector.extract_strided_slice %40 {offsets = [0, 32], sizes = [2, 32], strides = [1, 1]} : vector<2x128xf32> to vector<2x32xf32>
    %43 = vector.extract_strided_slice %40 {offsets = [0, 96], sizes = [2, 32], strides = [1, 1]} : vector<2x128xf32> to vector<2x32xf32>
    %44 = vector.extract_strided_slice %35 {offsets = [0, 64], sizes = [2, 32], strides = [1, 1]} : vector<2x128xf32> to vector<2x32xf32>
    %45 = math.tanh %44 : vector<2x32xf32>
    %46 = arith.mulf %42, %30 : vector<2x32xf32>
    %47 = arith.mulf %41, %45 : vector<2x32xf32>
    %48 = arith.addf %46, %47 : vector<2x32xf32>
    %49 = math.tanh %48 : vector<2x32xf32>
    %50 = arith.mulf %43, %49 : vector<2x32xf32>
    %cst_13 = arith.constant dense<0.000000e+00> : vector<2x128xf32>
    %51 = tpu.matmul %50, %13, %cst_13 {dimension_numbers = #tpu.dot_dimension_numbers<[1], [0], [0], [1], [0, 0, 1, 1], [], []>} : vector<2x32xf32>, vector<32x128xf32>, vector<2x128xf32> -> vector<2x128xf32>
    %52 = arith.addf %16, %51 : vector<2x128xf32>
    %53 = arith.negf %52 : vector<2x128xf32>
    %54 = math.exp %53 : vector<2x128xf32>
    %cst_14 = arith.constant 1.000000e+00 : f32
    %55 = vector.broadcast %cst_14 : f32 to vector<2x128xf32>
    %56 = arith.addf %55, %54 : vector<2x128xf32>
    %57 = arith.divf %55, %56 : vector<2x128xf32>
    %58 = vector.extract_strided_slice %57 {offsets = [0, 0], sizes = [2, 32], strides = [1, 1]} : vector<2x128xf32> to vector<2x32xf32>
    %59 = vector.extract_strided_slice %57 {offsets = [0, 32], sizes = [2, 32], strides = [1, 1]} : vector<2x128xf32> to vector<2x32xf32>
    %60 = vector.extract_strided_slice %57 {offsets = [0, 96], sizes = [2, 32], strides = [1, 1]} : vector<2x128xf32> to vector<2x32xf32>
    %61 = vector.extract_strided_slice %52 {offsets = [0, 64], sizes = [2, 32], strides = [1, 1]} : vector<2x128xf32> to vector<2x32xf32>
    %62 = math.tanh %61 : vector<2x32xf32>
    %63 = arith.mulf %59, %48 : vector<2x32xf32>
    %64 = arith.mulf %58, %62 : vector<2x32xf32>
    %65 = arith.addf %63, %64 : vector<2x32xf32>
    %66 = math.tanh %65 : vector<2x32xf32>
    %67 = arith.mulf %60, %66 : vector<2x32xf32>
    %cst_15 = arith.constant dense<0.000000e+00> : vector<2x128xf32>
    %68 = tpu.matmul %67, %13, %cst_15 {dimension_numbers = #tpu.dot_dimension_numbers<[1], [0], [0], [1], [0, 0, 1, 1], [], []>} : vector<2x32xf32>, vector<32x128xf32>, vector<2x128xf32> -> vector<2x128xf32>
    %69 = arith.addf %17, %68 : vector<2x128xf32>
    %70 = arith.negf %69 : vector<2x128xf32>
    %71 = math.exp %70 : vector<2x128xf32>
    %cst_16 = arith.constant 1.000000e+00 : f32
    %72 = vector.broadcast %cst_16 : f32 to vector<2x128xf32>
    %73 = arith.addf %72, %71 : vector<2x128xf32>
    %74 = arith.divf %72, %73 : vector<2x128xf32>
    %75 = vector.extract_strided_slice %74 {offsets = [0, 0], sizes = [2, 32], strides = [1, 1]} : vector<2x128xf32> to vector<2x32xf32>
    %76 = vector.extract_strided_slice %74 {offsets = [0, 32], sizes = [2, 32], strides = [1, 1]} : vector<2x128xf32> to vector<2x32xf32>
    %77 = vector.extract_strided_slice %74 {offsets = [0, 96], sizes = [2, 32], strides = [1, 1]} : vector<2x128xf32> to vector<2x32xf32>
    %78 = vector.extract_strided_slice %69 {offsets = [0, 64], sizes = [2, 32], strides = [1, 1]} : vector<2x128xf32> to vector<2x32xf32>
    %79 = math.tanh %78 : vector<2x32xf32>
    %80 = arith.mulf %76, %65 : vector<2x32xf32>
    %81 = arith.mulf %75, %79 : vector<2x32xf32>
    %82 = arith.addf %80, %81 : vector<2x32xf32>
    %83 = math.tanh %82 : vector<2x32xf32>
    %84 = arith.mulf %77, %83 : vector<2x32xf32>
    %cst_17 = arith.constant dense<0.000000e+00> : vector<2x128xf32>
    %85 = tpu.matmul %84, %13, %cst_17 {dimension_numbers = #tpu.dot_dimension_numbers<[1], [0], [0], [1], [0, 0, 1, 1], [], []>} : vector<2x32xf32>, vector<32x128xf32>, vector<2x128xf32> -> vector<2x128xf32>
    %86 = arith.addf %18, %85 : vector<2x128xf32>
    %87 = arith.negf %86 : vector<2x128xf32>
    %88 = math.exp %87 : vector<2x128xf32>
    %cst_18 = arith.constant 1.000000e+00 : f32
    %89 = vector.broadcast %cst_18 : f32 to vector<2x128xf32>
    %90 = arith.addf %89, %88 : vector<2x128xf32>
    %91 = arith.divf %89, %90 : vector<2x128xf32>
    %92 = vector.extract_strided_slice %91 {offsets = [0, 0], sizes = [2, 32], strides = [1, 1]} : vector<2x128xf32> to vector<2x32xf32>
    %93 = vector.extract_strided_slice %91 {offsets = [0, 32], sizes = [2, 32], strides = [1, 1]} : vector<2x128xf32> to vector<2x32xf32>
    %94 = vector.extract_strided_slice %91 {offsets = [0, 96], sizes = [2, 32], strides = [1, 1]} : vector<2x128xf32> to vector<2x32xf32>
    %95 = vector.extract_strided_slice %86 {offsets = [0, 64], sizes = [2, 32], strides = [1, 1]} : vector<2x128xf32> to vector<2x32xf32>
    %96 = math.tanh %95 : vector<2x32xf32>
    %97 = arith.mulf %93, %82 : vector<2x32xf32>
    %98 = arith.mulf %92, %96 : vector<2x32xf32>
    %99 = arith.addf %97, %98 : vector<2x32xf32>
    %100 = math.tanh %99 : vector<2x32xf32>
    %101 = arith.mulf %94, %100 : vector<2x32xf32>
    %cst_19 = arith.constant dense<0.000000e+00> : vector<2x128xf32>
    %102 = tpu.matmul %101, %13, %cst_19 {dimension_numbers = #tpu.dot_dimension_numbers<[1], [0], [0], [1], [0, 0, 1, 1], [], []>} : vector<2x32xf32>, vector<32x128xf32>, vector<2x128xf32> -> vector<2x128xf32>
    %103 = arith.addf %19, %102 : vector<2x128xf32>
    %104 = arith.negf %103 : vector<2x128xf32>
    %105 = math.exp %104 : vector<2x128xf32>
    %cst_20 = arith.constant 1.000000e+00 : f32
    %106 = vector.broadcast %cst_20 : f32 to vector<2x128xf32>
    %107 = arith.addf %106, %105 : vector<2x128xf32>
    %108 = arith.divf %106, %107 : vector<2x128xf32>
    %109 = vector.extract_strided_slice %108 {offsets = [0, 0], sizes = [2, 32], strides = [1, 1]} : vector<2x128xf32> to vector<2x32xf32>
    %110 = vector.extract_strided_slice %108 {offsets = [0, 32], sizes = [2, 32], strides = [1, 1]} : vector<2x128xf32> to vector<2x32xf32>
    %111 = vector.extract_strided_slice %108 {offsets = [0, 96], sizes = [2, 32], strides = [1, 1]} : vector<2x128xf32> to vector<2x32xf32>
    %112 = vector.extract_strided_slice %103 {offsets = [0, 64], sizes = [2, 32], strides = [1, 1]} : vector<2x128xf32> to vector<2x32xf32>
    %113 = math.tanh %112 : vector<2x32xf32>
    %114 = arith.mulf %110, %99 : vector<2x32xf32>
    %115 = arith.mulf %109, %113 : vector<2x32xf32>
    %116 = arith.addf %114, %115 : vector<2x32xf32>
    %117 = math.tanh %116 : vector<2x32xf32>
    %118 = arith.mulf %111, %117 : vector<2x32xf32>
    %cst_21 = arith.constant dense<0.000000e+00> : vector<2x128xf32>
    %119 = tpu.matmul %118, %13, %cst_21 {dimension_numbers = #tpu.dot_dimension_numbers<[1], [0], [0], [1], [0, 0, 1, 1], [], []>} : vector<2x32xf32>, vector<32x128xf32>, vector<2x128xf32> -> vector<2x128xf32>
    %120 = arith.addf %20, %119 : vector<2x128xf32>
    %121 = arith.negf %120 : vector<2x128xf32>
    %122 = math.exp %121 : vector<2x128xf32>
    %cst_22 = arith.constant 1.000000e+00 : f32
    %123 = vector.broadcast %cst_22 : f32 to vector<2x128xf32>
    %124 = arith.addf %123, %122 : vector<2x128xf32>
    %125 = arith.divf %123, %124 : vector<2x128xf32>
    %126 = vector.extract_strided_slice %125 {offsets = [0, 0], sizes = [2, 32], strides = [1, 1]} : vector<2x128xf32> to vector<2x32xf32>
    %127 = vector.extract_strided_slice %125 {offsets = [0, 32], sizes = [2, 32], strides = [1, 1]} : vector<2x128xf32> to vector<2x32xf32>
    %128 = vector.extract_strided_slice %125 {offsets = [0, 96], sizes = [2, 32], strides = [1, 1]} : vector<2x128xf32> to vector<2x32xf32>
    %129 = vector.extract_strided_slice %120 {offsets = [0, 64], sizes = [2, 32], strides = [1, 1]} : vector<2x128xf32> to vector<2x32xf32>
    %130 = math.tanh %129 : vector<2x32xf32>
    %131 = arith.mulf %127, %116 : vector<2x32xf32>
    %132 = arith.mulf %126, %130 : vector<2x32xf32>
    %133 = arith.addf %131, %132 : vector<2x32xf32>
    %134 = math.tanh %133 : vector<2x32xf32>
    %135 = arith.mulf %128, %134 : vector<2x32xf32>
    %cst_23 = arith.constant dense<0.000000e+00> : vector<2x128xf32>
    %136 = tpu.matmul %135, %13, %cst_23 {dimension_numbers = #tpu.dot_dimension_numbers<[1], [0], [0], [1], [0, 0, 1, 1], [], []>} : vector<2x32xf32>, vector<32x128xf32>, vector<2x128xf32> -> vector<2x128xf32>
    %137 = arith.addf %21, %136 : vector<2x128xf32>
    %138 = arith.negf %137 : vector<2x128xf32>
    %139 = math.exp %138 : vector<2x128xf32>
    %cst_24 = arith.constant 1.000000e+00 : f32
    %140 = vector.broadcast %cst_24 : f32 to vector<2x128xf32>
    %141 = arith.addf %140, %139 : vector<2x128xf32>
    %142 = arith.divf %140, %141 : vector<2x128xf32>
    %143 = vector.extract_strided_slice %142 {offsets = [0, 0], sizes = [2, 32], strides = [1, 1]} : vector<2x128xf32> to vector<2x32xf32>
    %144 = vector.extract_strided_slice %142 {offsets = [0, 32], sizes = [2, 32], strides = [1, 1]} : vector<2x128xf32> to vector<2x32xf32>
    %145 = vector.extract_strided_slice %142 {offsets = [0, 96], sizes = [2, 32], strides = [1, 1]} : vector<2x128xf32> to vector<2x32xf32>
    %146 = vector.extract_strided_slice %137 {offsets = [0, 64], sizes = [2, 32], strides = [1, 1]} : vector<2x128xf32> to vector<2x32xf32>
    %147 = math.tanh %146 : vector<2x32xf32>
    %148 = arith.mulf %144, %133 : vector<2x32xf32>
    %149 = arith.mulf %143, %147 : vector<2x32xf32>
    %150 = arith.addf %148, %149 : vector<2x32xf32>
    %151 = math.tanh %150 : vector<2x32xf32>
    %152 = arith.mulf %145, %151 : vector<2x32xf32>
    %c0_25 = arith.constant 0 : index
    %c0_26 = arith.constant 0 : index
    %153 = vector.load %arg5[%c0_25, %c0_26] : memref<2x64xf32, #tpu.memory_space<vmem>>, vector<2x32xf32>
    tpu.vector_store %arg5[%c0_25, %c0_26], %152 {strides = array<i32>} : memref<2x64xf32, #tpu.memory_space<vmem>>, vector<2x32xf32>,
    %c0_27 = arith.constant 0 : index
    %c32 = arith.constant 32 : index
    %154 = vector.load %arg5[%c0_27, %c32] : memref<2x64xf32, #tpu.memory_space<vmem>>, vector<2x32xf32>
    tpu.vector_store %arg5[%c0_27, %c32], %150 {strides = array<i32>} : memref<2x64xf32, #tpu.memory_space<vmem>>, vector<2x32xf32>,
    return
  }
}

</mosaic_0001>

<bundles_post_ra>
// kernel: encoder_forward.1
= control target key start
LH: loop header
LB: loop body
LE: loop exit
PB: predicated region body
PF: predicated region fallthrough
CT: control target
= control target key end

     0   :  { %vm50_vm0 = vcmask 1041408   ;;  %v743_v0 = vmov 0   ;;  %v22_v12 = vlaneseq  ;;  %vm43_vm1 = vcmask 408576   ;;  %s745_s18 = smov 64   ;;  %s939_s0 = inlined_call_operand.vmem [shape: s32[16,1], index: 0, kind: input, shape index: {}]   ;;  %s940_s1 = inlined_call_operand.vmem [shape: f32[50,32], index: 1, kind: input, shape index: {}]   ;;  %s941_s2 = inlined_call_operand.vmem [shape: f32[32,128], index: 2, kind: input, shape index: {}]   ;;  %s942_s4 = inlined_call_operand.vmem [shape: f32[1,128], index: 4, kind: input, shape index: {}]   ;;  %s943_s3 = inlined_call_operand.vmem [shape: f32[32,128], index: 3, kind: input, shape index: {}]   ;;  %s944_s5 = inlined_call_operand.vmem [shape: f32[2,64], index: 5, kind: output, shape index: {}]  }
   0x1   :  { %676 = vset.pattern.permute.xlu0 %v743_v0  ;;  %v20_v1 = vld [vmem:[%s939_s0] sm:$0xff]  ;;  %v42_v2 = vld [vmem:[%s940_s1 + $0x30] sm:$0x3]  ;;  %v41_v3 = vld [vmem:[%s940_s1 + $0x28] sm:$0xff]  ;;  %677 = vset.pattern.permute.xlu2 %v743_v0  ;;  %v744_v15 = vmov 0.0   ;;  %vm85_vm3 = vcmask 261120  }
   0x2   :  { %25 = vperm.xlu0 %676, %v20_v1   ;;  %651 = vmatpush.msk.msra.mxu0 %vm50_vm0, %v42_v2  ;;  %v40_v4 = vld [vmem:[%s940_s1 + $0x20] sm:$0xff]  ;;  %v39_v5 = vld [vmem:[%s940_s1 + $0x18] sm:$0xff]  ;;  %v38_v6 = vld [vmem:[%s940_s1 + $0x10] sm:$0xff]  ;;  %v811_v13 = vand.u32 127, %v22_v12 }
   0x3   :  { %v37_v7 = vld [vmem:[%s940_s1 + $0x8] sm:$0xff]  ;;  %v36_v8 = vld [vmem:[%s940_s1] sm:$0xff]  ;;  %v80_v9 = vld [vmem:[%s941_s2 + $0x18] sm:$0xff] }
   0x4   :  { %64 = vmatpush.msra.mxu0 %v41_v3  ;;  %v79_v10 = vld [vmem:[%s941_s2 + $0x10] sm:$0xff]  ;;  %104 = vmatpush.msra.mxu1 %v80_v9  ;;  %v78_v11 = vld [vmem:[%s941_s2 + $0x8] sm:$0xff]  ;;  %v77_v17 = vld [vmem:[%s941_s2] sm:$0xff]  ;;  %s746_s2 = smov 96  }
   0x5   :  { %v823_v19 = vld [vmem:[%s942_s4] ss:$0 sm:$0xff]  ;;  %v834_v39 = vld [vmem:[%s943_s3 + $0x18] sm:$0xff]  ;;  %v839_v40 = vld [vmem:[%s943_s3 + $0x10] sm:$0xff] }
   0x6   :  { %65 = vmatpush.msra.mxu0 %v40_v4  ;;  %105 = vmatpush.msra.mxu1 %v79_v10  ;;  %v846_v41 = vld [vmem:[%s943_s3 + $0x8] sm:$0xff]  ;;  %v854_v42 = vld [vmem:[%s943_s3] sm:$0xff]  ;;  %s747_s3 = smov 32  }
   0x7   :  { %167 = vmatpush.msra.mxu2 %v834_v39  ;;  %239 = vmatpush.msra.mxu3 %v834_v39 }
   0x8   :  { %66 = vmatpush.msra.mxu0 %v39_v5  ;;  %106 = vmatpush.msra.mxu1 %v78_v11 }
   0x9   :  { %168 = vmatpush.msra.mxu2 %v839_v40  ;;  %240 = vmatpush.msra.mxu3 %v839_v40 }
   0xa   :  { %67 = vmatpush.msra.mxu0 %v38_v6  ;;  %107 = vmatpush.msra.mxu1 %v77_v17 }
   0xb   :  { %169 = vmatpush.msra.mxu2 %v846_v41  ;;  %241 = vmatpush.msra.mxu3 %v846_v41 }
   0xc   :  { %68 = vmatpush.msra.mxu0 %v37_v7  ;;  %445 = vmatpush.msrb.mxu1 %v834_v39 }
   0xd   :  { %170 = vmatpush.msra.mxu2 %v854_v42  ;;  %242 = vmatpush.msra.mxu3 %v854_v42 }
   0xe   :  { %69 = vmatpush.msra.mxu0 %v36_v8  ;;  %446 = vmatpush.msrb.mxu1 %v839_v40 }
   0xf   :  { %309 = vmatpush.msrb.mxu2 %v834_v39  ;;  %379 = vmatpush.msrb.mxu3 %v834_v39 }
  0x10   :  { %447 = vmatpush.msrb.mxu1 %v846_v41 }
  0x11   :  { %310 = vmatpush.msrb.mxu2 %v839_v40  ;;  %380 = vmatpush.msrb.mxu3 %v839_v40 }
  0x12   :  { %448 = vmatpush.msrb.mxu1 %v854_v42 }
  0x13   :  { %311 = vmatpush.msrb.mxu2 %v846_v41  ;;  %381 = vmatpush.msrb.mxu3 %v846_v41 }
  0x15   :  { %312 = vmatpush.msrb.mxu2 %v854_v42  ;;  %382 = vmatpush.msrb.mxu3 %v854_v42 }
  0x74   :  { %v26_v14 = vpop.permute.xlu0 %25 }
  0x75   :  { %vm30_vm2 = vcmp.eq.s32.totalorder %v26_v14, %v811_v13 }
  0x76   :  { %v649_v16 = vsel %vm30_vm2, 1.0, %v744_v15 }
  0x77   :  { %652 = vmatmul.msk.f32.vlgmr.msra.gmra.mxu0 %vm43_vm1, %v649_v16 }
  0xf4   :  { %v71_v18 = vpop.f32.mrf.mxu0 }
  0xf5   :  { %654 = vmatmul.msk.f32.vlgmr.msra.gmra.mxu1 %vm85_vm3, %v71_v18 }
 0x172   :  { %v109_v20 = vpop.f32.mrf.mxu1 }
 0x173   :  { %v826_v21 = vadd.f32 %v823_v19, %v109_v20 }
 0x175   :  { %679 = vtanh.f32 %v826_v21  ;;  %v656_v23 = vmul.f32 -1.442695, %v826_v21 }
 0x177   :  { %681 = vpow2.f32 %v656_v23 }
 0x17b   :  { %v680_v22 = vpop.eup %679 }
 0x17c   :  { %140 = vrot.lane.b32.xlu0 %v680_v22, %s745_s18 }
 0x17d   :  { %v682_v24 = vpop.eup %681 }
 0x17e   :  { %v122_v25 = vadd.f32 1.0, %v682_v24 }
 0x180   :  { %683 = vrcp.f32 %v122_v25  ;;  %v134_v31 = vand.u32 2147483648, %v122_v25  ;;  %vm128_vm5 = vweird.f32 %v122_v25  ;;  %v132_v32 = vand.u32 2147483647, %v122_v25 }
 0x182   :  { %v135_v34 = vor.u32 1.1754944e-38, %v134_v31  ;;  %vm133_vm7 = vcmp.eq.f32.partialorder %v132_v32, 8.507059e+37 }
 0x186   :  { %v684_v26 = vpop.eup %683 }
 0x187   :  { %v124_v27 = vmul.f32 %v684_v26, %v122_v25  ;;  %vm129_vm4 = vweird.f32 %v684_v26 }
 0x188   :  { %vm130_vm6 = vmor %vm128_vm5, %vm129_vm4 }
 0x189   :  { %v125_v28 = vsub.f32 1.0, %v124_v27 }
 0x18b   :  { %v126_v29 = vmul.f32 %v684_v26, %v125_v28 }
 0x18d   :  { %v127_v30 = vadd.f32 %v684_v26, %v126_v29 }
 0x18f   :  { %v131_v33 = vsel %vm130_vm6, %v684_v26, %v127_v30 }
 0x190   :  { %v136_v36 = vsel %vm133_vm7, %v135_v34, %v131_v33 }
 0x1ee   :  { %v141_v35 = vpop.permute.xlu0 %140 }
 0x1ef   :  { %v143_v37 = vmul.f32 %v141_v35, %v136_v36 }
 0x1f1   :  { %685 = vtanh.f32 %v143_v37  ;;  %v200_v50 = vrot.slane %v143_v37, 6 }
 0x1f7   :  { %v686_v38 = vpop.eup %685 }
 0x1f8   :  { %146 = vrot.lane.b32.xlu1 %v686_v38, %s746_s2 }
 0x26a   :  { %v147_v43 = vpop.permute.xlu1 %146 }
 0x26b   :  { %v149_v44 = vmul.f32 %v147_v43, %v136_v36 }
 0x26d   :  { %151 = vrot.lane.b32.xlu1 %v149_v44, %s747_s3 }
 0x2df   :  { %v152_v45 = vpop.permute.xlu1 %151 }
 0x2e0   :  { %657 = vmatmul.msk.f32.vlgmr.msra.gmra.mxu2 %vm85_vm3, %v152_v45 }
 0x2e1   :  { %515 = vmatpush.msra.mxu2 %v834_v39 }
 0x2e3   :  { %516 = vmatpush.msra.mxu2 %v839_v40 }
 0x2e5   :  { %517 = vmatpush.msra.mxu2 %v846_v41 }
 0x2e7   :  { %518 = vmatpush.msra.mxu2 %v854_v42 }
 0x363   :  { %v172_v46 = vpop.f32.mrf.mxu2 }
 0x364   :  { %v176_v47 = vrot.slane %v172_v46, 6 }
 0x366   :  { %v178_v48 = vadd.f32 %v176_v47, %v826_v21 }
 0x368   :  { %687 = vtanh.f32 %v178_v48  ;;  %v658_v51 = vmul.f32 -1.442695, %v178_v48 }
 0x36a   :  { %689 = vpow2.f32 %v658_v51 }
 0x36e   :  { %v688_v49 = vpop.eup %687 }
 0x36f   :  { %206 = vrot.lane.b32.xlu2 %v688_v49, %s745_s18 }
 0x370   :  { %v690_v52 = vpop.eup %689 }
 0x371   :  { %v182_v53 = vadd.f32 1.0, %v690_v52 }
 0x373   :  { %691 = vrcp.f32 %v182_v53  ;;  %v194_v59 = vand.u32 2147483648, %v182_v53  ;;  %vm188_vm9 = vweird.f32 %v182_v53  ;;  %v192_v60 = vand.u32 2147483647, %v182_v53 }
 0x375   :  { %v195_v62 = vor.u32 1.1754944e-38, %v194_v59  ;;  %vm193_vm11 = vcmp.eq.f32.partialorder %v192_v60, 8.507059e+37 }
 0x377   :  { %201 = vrot.lane.b32.xlu2 %v200_v50, %s747_s3 }
 0x379   :  { %v692_v54 = vpop.eup %691 }
 0x37a   :  { %v184_v55 = vmul.f32 %v692_v54, %v182_v53  ;;  %vm189_vm8 = vweird.f32 %v692_v54 }
 0x37b   :  { %vm190_vm10 = vmor %vm188_vm9, %vm189_vm8 }
 0x37c   :  { %v185_v56 = vsub.f32 1.0, %v184_v55 }
 0x37e   :  { %v186_v57 = vmul.f32 %v692_v54, %v185_v56 }
 0x380   :  { %v187_v58 = vadd.f32 %v692_v54, %v186_v57 }
 0x382   :  { %v191_v61 = vsel %vm190_vm10, %v692_v54, %v187_v58 }
 0x383   :  { %v196_v0 = vsel %vm193_vm11, %v195_v62, %v191_v61  ;;  %v21_v61 = vld [vmem:[%s939_s0 + $0x8] sm:$0xff] }
 0x3c9   :  { %v207_v63 = vpop.permute.xlu2 %206 }
 0x3ca   :  { %v209_v1 = vmul.f32 %v207_v63, %v196_v0 }
 0x3cc   :  { %211 = vrot.lane.b32.xlu0 %v209_v1, %s747_s3 }
 0x3d1   :  { %v202_v2 = vpop.permute.xlu2 %201 }
 0x3d2   :  { %v204_v3 = vmul.f32 %v202_v2, %v196_v0 }
 0x43e   :  { %v212_v4 = vpop.permute.xlu0 %211 }
 0x43f   :  { %v214_v5 = vadd.f32 %v212_v4, %v204_v3 }
 0x441   :  { %693 = vtanh.f32 %v214_v5  ;;  %v272_v34 = vrot.slane %v214_v5, 6 }
 0x447   :  { %v694_v6 = vpop.eup %693 }
 0x448   :  { %217 = vrot.lane.b32.xlu1 %v694_v6, %s745_s18 }
 0x4ba   :  { %v218_v7 = vpop.permute.xlu1 %217 }
 0x4bb   :  { %v220_v8 = vmul.f32 %v218_v7, %v196_v0 }
 0x4bd   :  { %v222_v9 = vrot.slane %v220_v8, 2 }
 0x4bf   :  { %223 = vrot.lane.b32.xlu2 %v222_v9, %s747_s3 }
 0x519   :  { %v224_v10 = vpop.permute.xlu2 %223 }
 0x51a   :  { %659 = vmatmul.msk.f32.vlgmr.msra.gmra.mxu3 %vm85_vm3, %v224_v10 }
 0x51b   :  { %585 = vmatpush.msra.mxu3 %v834_v39 }
 0x51d   :  { %586 = vmatpush.msra.mxu3 %v839_v40 }
 0x51f   :  { %587 = vmatpush.msra.mxu3 %v846_v41 }
 0x521   :  { %588 = vmatpush.msra.mxu3 %v854_v42 }
 0x59d   :  { %v244_v11 = vpop.f32.mrf.mxu3 }
 0x59e   :  { %v248_v12 = vrot.slane %v244_v11, 4 }
 0x5a0   :  { %v250_v14 = vadd.f32 %v248_v12, %v826_v21 }
 0x5a2   :  { %695 = vtanh.f32 %v250_v14  ;;  %v660_v17 = vmul.f32 -1.442695, %v250_v14 }
 0x5a4   :  { %697 = vpow2.f32 %v660_v17 }
 0x5a8   :  { %v696_v16 = vpop.eup %695 }
 0x5a9   :  { %276 = vrot.lane.b32.xlu0 %v696_v16, %s745_s18 }
 0x5aa   :  { %v698_v18 = vpop.eup %697 }
 0x5ab   :  { %v254_v20 = vadd.f32 1.0, %v698_v18 }
 0x5ad   :  { %699 = vrcp.f32 %v254_v20  ;;  %v266_v27 = vand.u32 2147483648, %v254_v20  ;;  %vm260_vm13 = vweird.f32 %v254_v20  ;;  %v264_v28 = vand.u32 2147483647, %v254_v20 }
 0x5af   :  { %v267_v30 = vor.u32 1.1754944e-38, %v266_v27  ;;  %vm265_vm15 = vcmp.eq.f32.partialorder %v264_v28, 8.507059e+37 }
 0x5b3   :  { %v700_v22 = vpop.eup %699 }
 0x5b4   :  { %v256_v23 = vmul.f32 %v700_v22, %v254_v20  ;;  %vm261_vm12 = vweird.f32 %v700_v22 }
 0x5b5   :  { %vm262_vm14 = vmor %vm260_vm13, %vm261_vm12 }
 0x5b6   :  { %v257_v24 = vsub.f32 1.0, %v256_v23 }
 0x5b8   :  { %v258_v25 = vmul.f32 %v700_v22, %v257_v24 }
 0x5ba   :  { %v259_v26 = vadd.f32 %v700_v22, %v258_v25 }
 0x5bc   :  { %v263_v29 = vsel %vm262_vm14, %v700_v22, %v259_v26 }
 0x5bd   :  { %v268_v32 = vsel %vm265_vm15, %v267_v30, %v263_v29 }
 0x5be   :  { %v274_v35 = vmul.f32 %v272_v34, %v268_v32 }
 0x61b   :  { %v277_v31 = vpop.permute.xlu0 %276 }
 0x61c   :  { %v279_v33 = vmul.f32 %v277_v31, %v268_v32 }
 0x61e   :  { %281 = vrot.lane.b32.xlu1 %v279_v33, %s747_s3 }
 0x690   :  { %v282_v36 = vpop.permute.xlu1 %281 }
 0x691   :  { %v284_v37 = vadd.f32 %v282_v36, %v274_v35 }
 0x693   :  { %701 = vtanh.f32 %v284_v37  ;;  %v342_v62 = vrot.slane %v284_v37, 6 }
 0x699   :  { %v702_v38 = vpop.eup %701 }
 0x69a   :  { %287 = vrot.lane.b32.xlu2 %v702_v38, %s745_s18 }
 0x6a2   :  { %28 = vperm.xlu2 %677, %v21_v61  }
 0x6f4   :  { %v288_v39 = vpop.permute.xlu2 %287 }
 0x6f5   :  { %v290_v40 = vmul.f32 %v288_v39, %v268_v32 }
 0x6f7   :  { %v292_v41 = vrot.slane %v290_v40, 4 }
 0x6f9   :  { %293 = vrot.lane.b32.xlu0 %v292_v41, %s747_s3 }
 0x6fc   :  { %v29_v3 = vpop.permute.xlu2 %28 }
 0x6fd   :  { %vm31_vm6 = vcmp.eq.s32.totalorder %v29_v3, %v811_v13 }
 0x6fe   :  { %v650_v4 = vsel %vm31_vm6, 1.0, %v744_v15 }
 0x6ff   :  { %653 = vmatmul.msk.f32.gmra.mxu0 %vm43_vm1, %v650_v4 }
 0x76b   :  { %v294_v42 = vpop.permute.xlu0 %293 }
 0x76c   :  { %661 = vmatmul.msk.f32.vlgmr.msrb.gmra.mxu2 %vm85_vm3, %v294_v42 }
 0x77c   :  { %v74_v8 = vpop.f32.mrf.mxu0 }
 0x77d   :  { %655 = vmatmul.msk.f32.gmra.mxu1 %vm85_vm3, %v74_v8 }
 0x7ef   :  { %v314_v43 = vpop.f32.mrf.mxu2 }
 0x7f0   :  { %v318_v44 = vrot.slane %v314_v43, 2 }
 0x7f2   :  { %v320_v45 = vadd.f32 %v318_v44, %v826_v21 }
 0x7f4   :  { %703 = vtanh.f32 %v320_v45  ;;  %v662_v47 = vmul.f32 -1.442695, %v320_v45 }
 0x7f6   :  { %705 = vpow2.f32 %v662_v47 }
 0x7fa   :  { %v704_v46 = vpop.eup %703  ;;  %v112_v10 = vpop.f32.mrf.mxu1 }
 0x7fb   :  { %346 = vrot.lane.b32.xlu1 %v704_v46, %s745_s18  ;;  %v908_v11 = vadd.f32 %v823_v19, %v112_v10 }
 0x7fc   :  { %v706_v48 = vpop.eup %705 }
 0x7fd   :  { %v324_v49 = vadd.f32 1.0, %v706_v48 }
 0x7ff   :  { %707 = vrcp.f32 %v324_v49  ;;  %v336_v55 = vand.u32 2147483648, %v324_v49  ;;  %vm330_vm2 = vweird.f32 %v324_v49  ;;  %v334_v56 = vand.u32 2147483647, %v324_v49 }
 0x801   :  { %v337_v57 = vor.u32 1.1754944e-38, %v336_v55  ;;  %vm335_vm5 = vcmp.eq.f32.partialorder %v334_v56, 8.507059e+37 }
 0x805   :  { %v708_v50 = vpop.eup %707 }
 0x806   :  { %v326_v51 = vmul.f32 %v708_v50, %v324_v49  ;;  %vm331_vm0 = vweird.f32 %v708_v50 }
 0x807   :  { %vm332_vm4 = vmor %vm330_vm2, %vm331_vm0 }
 0x808   :  { %v327_v52 = vsub.f32 1.0, %v326_v51 }
 0x80a   :  { %v328_v53 = vmul.f32 %v708_v50, %v327_v52 }
 0x80c   :  { %v329_v54 = vadd.f32 %v708_v50, %v328_v53 }
 0x80e   :  { %v333_v21 = vsel %vm332_vm4, %v708_v50, %v329_v54 }
 0x80f   :  { %v338_v59 = vsel %vm335_vm5, %v337_v57, %v333_v21 }
 0x810   :  { %v344_v63 = vmul.f32 %v342_v62, %v338_v59 }
 0x86d   :  { %v347_v58 = vpop.permute.xlu1 %346 }
 0x86e   :  { %v349_v60 = vmul.f32 %v347_v58, %v338_v59 }
 0x870   :  { %351 = vrot.lane.b32.xlu0 %v349_v60, %s747_s3 }
 0x8e2   :  { %v352_v0 = vpop.permute.xlu0 %351 }
 0x8e3   :  { %v354_v1 = vadd.f32 %v352_v0, %v344_v63 }
 0x8e5   :  { %709 = vtanh.f32 %v354_v1  ;;  %v409_v31 = vrot.slane %v354_v1, 6 }
 0x8eb   :  { %v710_v2 = vpop.eup %709 }
 0x8ec   :  { %357 = vrot.lane.b32.xlu1 %v710_v2, %s745_s18 }
 0x95e   :  { %v358_v5 = vpop.permute.xlu1 %357 }
 0x95f   :  { %v360_v6 = vmul.f32 %v358_v5, %v338_v59 }
 0x961   :  { %v362_v7 = vrot.slane %v360_v6, 6 }
 0x963   :  { %363 = vrot.lane.b32.xlu2 %v362_v7, %s747_s3 }
 0x9bd   :  { %v364_v9 = vpop.permute.xlu2 %363 }
 0x9be   :  { %663 = vmatmul.msk.f32.vlgmr.msrb.gmra.mxu3 %vm85_vm3, %v364_v9 }
 0xa41   :  { %v384_v13 = vpop.f32.mrf.mxu3 }
 0xa42   :  { %v387_v15 = vadd.f32 %v384_v13, %v908_v11 }
 0xa44   :  { %711 = vtanh.f32 %v387_v15  ;;  %v664_v14 = vmul.f32 -1.442695, %v387_v15 }
 0xa46   :  { %713 = vpow2.f32 %v664_v14 }
 0xa4a   :  { %v712_v12 = vpop.eup %711 }
 0xa4b   :  { %413 = vrot.lane.b32.xlu0 %v712_v12, %s745_s18 }
 0xa4c   :  { %v714_v16 = vpop.eup %713 }
 0xa4d   :  { %v391_v17 = vadd.f32 1.0, %v714_v16 }
 0xa4f   :  { %715 = vrcp.f32 %v391_v17  ;;  %v403_v19 = vand.u32 2147483648, %v391_v17  ;;  %vm397_vm7 = vweird.f32 %v391_v17  ;;  %v401_v25 = vand.u32 2147483647, %v391_v17 }
 0xa51   :  { %v404_v27 = vor.u32 1.1754944e-38, %v403_v19  ;;  %vm402_vm9 = vcmp.eq.f32.partialorder %v401_v25, 8.507059e+37 }
 0xa55   :  { %v716_v18 = vpop.eup %715 }
 0xa56   :  { %v393_v20 = vmul.f32 %v716_v18, %v391_v17  ;;  %vm398_vm1 = vweird.f32 %v716_v18 }
 0xa57   :  { %vm399_vm8 = vmor %vm397_vm7, %vm398_vm1  ;;  %vm641_vm1 = vcmask 261126   ;;  %vm643_vm7 = vcmask 523526  }
 0xa58   :  { %v394_v22 = vsub.f32 1.0, %v393_v20 }
 0xa5a   :  { %v395_v23 = vmul.f32 %v716_v18, %v394_v22 }
 0xa5c   :  { %v396_v24 = vadd.f32 %v716_v18, %v395_v23 }
 0xa5e   :  { %v400_v26 = vsel %vm399_vm8, %v716_v18, %v396_v24 }
 0xa5f   :  { %v405_v29 = vsel %vm402_vm9, %v404_v27, %v400_v26 }
 0xa60   :  { %v411_v32 = vmul.f32 %v409_v31, %v405_v29 }
 0xabd   :  { %v414_v28 = vpop.permute.xlu0 %413 }
 0xabe   :  { %v416_v30 = vmul.f32 %v414_v28, %v405_v29 }
 0xac0   :  { %418 = vrot.lane.b32.xlu1 %v416_v30, %s747_s3 }
 0xb32   :  { %v419_v33 = vpop.permute.xlu1 %418 }
 0xb33   :  { %v421_v34 = vadd.f32 %v419_v33, %v411_v32 }
 0xb35   :  { %717 = vtanh.f32 %v421_v34  ;;  %v478_v57 = vrot.slane %v421_v34, 6 }
 0xb3b   :  { %v718_v35 = vpop.eup %717 }
 0xb3c   :  { %424 = vrot.lane.b32.xlu2 %v718_v35, %s745_s18 }
 0xb96   :  { %v425_v36 = vpop.permute.xlu2 %424 }
 0xb97   :  { %v427_v37 = vmul.f32 %v425_v36, %v405_v29 }
 0xb99   :  { %429 = vrot.lane.b32.xlu0 %v427_v37, %s747_s3 }
 0xc0b   :  { %v430_v38 = vpop.permute.xlu0 %429 }
 0xc0c   :  { %665 = vmatmul.msk.f32.vlgmr.msrb.gmra.mxu1 %vm85_vm3, %v430_v38 }
 0xc89   :  { %v450_v39 = vpop.f32.mrf.mxu1 }
 0xc8a   :  { %v454_v40 = vrot.slane %v450_v39, 6 }
 0xc8c   :  { %v456_v41 = vadd.f32 %v454_v40, %v908_v11 }
 0xc8e   :  { %719 = vtanh.f32 %v456_v41  ;;  %v666_v43 = vmul.f32 -1.442695, %v456_v41 }
 0xc90   :  { %721 = vpow2.f32 %v666_v43 }
 0xc94   :  { %v720_v42 = vpop.eup %719 }
 0xc95   :  { %482 = vrot.lane.b32.xlu1 %v720_v42, %s745_s18 }
 0xc96   :  { %v722_v44 = vpop.eup %721 }
 0xc97   :  { %v460_v45 = vadd.f32 1.0, %v722_v44 }
 0xc99   :  { %723 = vrcp.f32 %v460_v45  ;;  %v472_v51 = vand.u32 2147483648, %v460_v45  ;;  %vm466_vm11 = vweird.f32 %v460_v45  ;;  %v470_v52 = vand.u32 2147483647, %v460_v45 }
 0xc9b   :  { %v473_v54 = vor.u32 1.1754944e-38, %v472_v51  ;;  %vm471_vm13 = vcmp.eq.f32.partialorder %v470_v52, 8.507059e+37 }
 0xc9f   :  { %v724_v46 = vpop.eup %723 }
 0xca0   :  { %v462_v47 = vmul.f32 %v724_v46, %v460_v45  ;;  %vm467_vm10 = vweird.f32 %v724_v46 }
 0xca1   :  { %vm468_vm12 = vmor %vm466_vm11, %vm467_vm10 }
 0xca2   :  { %v463_v48 = vsub.f32 1.0, %v462_v47 }
 0xca4   :  { %v464_v49 = vmul.f32 %v724_v46, %v463_v48 }
 0xca6   :  { %v465_v50 = vadd.f32 %v724_v46, %v464_v49 }
 0xca8   :  { %v469_v53 = vsel %vm468_vm12, %v724_v46, %v465_v50 }
 0xca9   :  { %v474_v56 = vsel %vm471_vm13, %v473_v54, %v469_v53 }
 0xcaa   :  { %v480_v58 = vmul.f32 %v478_v57, %v474_v56 }
 0xd07   :  { %v483_v55 = vpop.permute.xlu1 %482 }
 0xd08   :  { %v485_v21 = vmul.f32 %v483_v55, %v474_v56 }
 0xd0a   :  { %487 = vrot.lane.b32.xlu2 %v485_v21, %s747_s3 }
 0xd64   :  { %v488_v59 = vpop.permute.xlu2 %487 }
 0xd65   :  { %v490_v60 = vadd.f32 %v488_v59, %v480_v58 }
 0xd67   :  { %725 = vtanh.f32 %v490_v60  ;;  %v548_v24 = vrot.slane %v490_v60, 6 }
 0xd6d   :  { %v726_v61 = vpop.eup %725 }
 0xd6e   :  { %493 = vrot.lane.b32.xlu0 %v726_v61, %s745_s18 }
 0xde0   :  { %v494_v62 = vpop.permute.xlu0 %493 }
 0xde1   :  { %v496_v63 = vmul.f32 %v494_v62, %v474_v56 }
 0xde3   :  { %v498_v0 = vrot.slane %v496_v63, 2 }
 0xde5   :  { %499 = vrot.lane.b32.xlu1 %v498_v0, %s747_s3 }
 0xe57   :  { %v500_v1 = vpop.permute.xlu1 %499 }
 0xe58   :  { %667 = vmatmul.msk.f32.vlgmr.msra.gmra.mxu2 %vm85_vm3, %v500_v1 }
 0xedb   :  { %v520_v2 = vpop.f32.mrf.mxu2 }
 0xedc   :  { %v524_v3 = vrot.slane %v520_v2, 4 }
 0xede   :  { %v526_v4 = vadd.f32 %v524_v3, %v908_v11 }
 0xee0   :  { %727 = vtanh.f32 %v526_v4  ;;  %v668_v6 = vmul.f32 -1.442695, %v526_v4 }
 0xee2   :  { %729 = vpow2.f32 %v668_v6 }
 0xee6   :  { %v728_v5 = vpop.eup %727 }
 0xee7   :  { %552 = vrot.lane.b32.xlu2 %v728_v5, %s745_s18 }
 0xee8   :  { %v730_v7 = vpop.eup %729 }
 0xee9   :  { %v530_v8 = vadd.f32 1.0, %v730_v7 }
 0xeeb   :  { %731 = vrcp.f32 %v530_v8  ;;  %v542_v14 = vand.u32 2147483648, %v530_v8  ;;  %vm536_vm15 = vweird.f32 %v530_v8  ;;  %v540_v16 = vand.u32 2147483647, %v530_v8 }
 0xeed   :  { %v543_v18 = vor.u32 1.1754944e-38, %v542_v14  ;;  %vm541_vm2 = vcmp.eq.f32.partialorder %v540_v16, 8.507059e+37 }
 0xef1   :  { %v732_v9 = vpop.eup %731 }
 0xef2   :  { %v532_v10 = vmul.f32 %v732_v9, %v530_v8  ;;  %vm537_vm14 = vweird.f32 %v732_v9 }
 0xef3   :  { %vm538_vm0 = vmor %vm536_vm15, %vm537_vm14 }
 0xef4   :  { %v533_v13 = vsub.f32 1.0, %v532_v10 }
 0xef6   :  { %v534_v15 = vmul.f32 %v732_v9, %v533_v13 }
 0xef8   :  { %v535_v12 = vadd.f32 %v732_v9, %v534_v15 }
 0xefa   :  { %v539_v17 = vsel %vm538_vm0, %v732_v9, %v535_v12 }
 0xefb   :  { %v544_v22 = vsel %vm541_vm2, %v543_v18, %v539_v17 }
 0xefc   :  { %v550_v19 = vmul.f32 %v548_v24, %v544_v22 }
 0xf41   :  { %v553_v20 = vpop.permute.xlu2 %552 }
 0xf42   :  { %v555_v23 = vmul.f32 %v553_v20, %v544_v22 }
 0xf44   :  { %557 = vrot.lane.b32.xlu0 %v555_v23, %s747_s3 }
 0xfb6   :  { %v558_v25 = vpop.permute.xlu0 %557 }
 0xfb7   :  { %v560_v26 = vadd.f32 %v558_v25, %v550_v19 }
 0xfb9   :  { %733 = vtanh.f32 %v560_v26  ;;  %v618_v50 = vrot.slane %v560_v26, 6 }
 0xfbf   :  { %v734_v27 = vpop.eup %733 }
 0xfc0   :  { %563 = vrot.lane.b32.xlu1 %v734_v27, %s745_s18 }
0x1032   :  { %v564_v28 = vpop.permute.xlu1 %563 }
0x1033   :  { %v566_v29 = vmul.f32 %v564_v28, %v544_v22 }
0x1035   :  { %v568_v30 = vrot.slane %v566_v29, 4 }
0x1037   :  { %569 = vrot.lane.b32.xlu2 %v568_v30, %s747_s3 }
0x1091   :  { %v570_v31 = vpop.permute.xlu2 %569 }
0x1092   :  { %669 = vmatmul.msk.f32.vlgmr.msra.gmra.mxu3 %vm85_vm3, %v570_v31 }
0x1115   :  { %v590_v32 = vpop.f32.mrf.mxu3 }
0x1116   :  { %v594_v33 = vrot.slane %v590_v32, 2 }
0x1118   :  { %v596_v34 = vadd.f32 %v594_v33, %v908_v11 }
0x111a   :  { %735 = vtanh.f32 %v596_v34  ;;  %v670_v36 = vmul.f32 -1.442695, %v596_v34 }
0x111c   :  { %737 = vpow2.f32 %v670_v36 }
0x1120   :  { %v736_v35 = vpop.eup %735 }
0x1121   :  { %622 = vrot.lane.b32.xlu0 %v736_v35, %s745_s18 }
0x1122   :  { %v738_v37 = vpop.eup %737 }
0x1123   :  { %v600_v38 = vadd.f32 1.0, %v738_v37 }
0x1125   :  { %739 = vrcp.f32 %v600_v38  ;;  %v612_v44 = vand.u32 2147483648, %v600_v38  ;;  %vm606_vm3 = vweird.f32 %v600_v38  ;;  %v610_v45 = vand.u32 2147483647, %v600_v38 }
0x1127   :  { %v613_v46 = vor.u32 1.1754944e-38, %v612_v44  ;;  %vm611_vm6 = vcmp.eq.f32.partialorder %v610_v45, 8.507059e+37 }
0x112b   :  { %v740_v39 = vpop.eup %739 }
0x112c   :  { %v602_v40 = vmul.f32 %v740_v39, %v600_v38  ;;  %vm607_vm4 = vweird.f32 %v740_v39 }
0x112d   :  { %vm608_vm5 = vmor %vm606_vm3, %vm607_vm4 }
0x112e   :  { %v603_v41 = vsub.f32 1.0, %v602_v40 }
0x1130   :  { %v604_v42 = vmul.f32 %v740_v39, %v603_v41 }
0x1132   :  { %v605_v43 = vadd.f32 %v740_v39, %v604_v42 }
0x1134   :  { %v609_v11 = vsel %vm608_vm5, %v740_v39, %v605_v43 }
0x1135   :  { %v614_v48 = vsel %vm611_vm6, %v613_v46, %v609_v11 }
0x1136   :  { %v620_v51 = vmul.f32 %v618_v50, %v614_v48 }
0x1193   :  { %v623_v47 = vpop.permute.xlu0 %622 }
0x1194   :  { %v625_v49 = vmul.f32 %v623_v47, %v614_v48 }
0x1196   :  { %627 = vrot.lane.b32.xlu1 %v625_v49, %s747_s3 }
0x1208   :  { %v628_v52 = vpop.permute.xlu1 %627 }
0x1209   :  { %v630_v53 = vadd.f32 %v628_v52, %v620_v51 }
0x120b   :  { %741 = vtanh.f32 %v630_v53 }
0x1211   :  { %v742_v54 = vpop.eup %741 }
0x1212   :  { %633 = vrot.lane.b32.xlu2 %v742_v54, %s745_s18 }
0x126c   :  { %v634_v55 = vpop.permute.xlu2 %633 }
0x126d   :  { %v636_v56 = vmul.f32 %v634_v55, %v614_v48 }
0x126f   :  { %638 = vrot.lane.b32.xlu0 %v636_v56, %s747_s3 }
0x12e1   :  { %v639_v21 = vpop.permute.xlu0 %638 }
0x12e2   :  { %642 = vst.msk [vmem:[%s944_s5 - $0x6] sm:$0xc0] %vm641_vm1, %v639_v21 }
0x12e3   :  { %644 = vst.msk [vmem:[%s944_s5 - $0x6] sm:$0xc0] %vm643_vm7, %v630_v53 }

</bundles_post_ra>
